<compile_context>
chip_gen: v7x
topology: tpu7x:2x2x1
jax: 0.10.0
libtpu: 0.0.40
codegen_flags: <defaults>
</compile_context>

<pallas_src>
import functools

import numpy as np
import jax
import jax.numpy as jnp
from jax import lax
from jax.experimental import pallas as pl
from jax.experimental.pallas import tpu as pltpu

EPS = 1e-5  # nn.InstanceNorm2d default eps (affine=False by default)


# ---------------------------------------------------------------------------
# Fused kernel: conv1 + IN + ReLU + conv2 + IN + residual, one batch element.
# ---------------------------------------------------------------------------
def _residual_block_kernel(x_ref, rc_ref, w1_ref, w2_ref, o_ref, *, h, w):
    # x_ref : (C, H*W)  f32   input slab (spatial flattened, lane-dense)
    # rc_ref: (2, H*W)  i32   row / col index of every flattened position
    # w*_ref: (9, C, C) bf16  tap-major conv weights (t = ky*3 + kx)
    # o_ref : (C, H*W)  f32   x + IN(conv2(relu(IN(conv1(x)))))
    c, hw = x_ref.shape
    x = x_ref[...]                                  # f32

    rows = rc_ref[0:1, :]                           # (1, HW) int32
    cols = rc_ref[1:2, :]                           # (1, HW) int32
    top, bot = rows == 0, rows == h - 1
    lft, rgt = cols == 0, cols == w - 1

    def shift(v, s):
        # result[:, p] = v[:, p - s].  Lanes that wrap across row / array
        # boundaries are exactly the ones overridden by the reflection masks
        # below, so wrapped values are never used.
        return jnp.roll(v, s, axis=1)

    def taps3x3(v):
        """Nine reflection-padded 3x3 taps of v (C, HW), ordered t = ky*3+kx."""
        vm = shift(v, w)        # source row y-1
        vp = shift(v, -w)       # source row y+1
        up = jnp.where(top, vp, vm)      # ky=0: reflect at top row
        dn = jnp.where(bot, vm, vp)      # ky=2: reflect at bottom row
        taps = []
        for vv in (up, v, dn):                       # ky = 0, 1, 2
            hm = shift(vv, 1)   # source col x-1
            hp = shift(vv, -1)  # source col x+1
            l = jnp.where(lft, hp, hm)   # kx=0: reflect at left edge
            r = jnp.where(rgt, hm, hp)   # kx=2: reflect at right edge
            taps.extend((l, vv, r))                  # kx = 0, 1, 2
        return taps

    def conv3x3_instancenorm(v, w_taps):
        """v: (C, HW) f32; w_taps: (9, C_out, C_in) bf16 -> IN(conv3x3(v)) f32."""
        acc = jnp.zeros((c, hw), jnp.float32)
        for t, tap in enumerate(taps3x3(v)):
            # bf16 x bf16 on the MXU, f32 accumulation.
            acc = acc + jnp.dot(w_taps[t], tap.astype(jnp.bfloat16),
                                preferred_element_type=jnp.float32)
        mu = jnp.mean(acc, axis=1, keepdims=True)
        d = acc - mu
        var = jnp.mean(d * d, axis=1, keepdims=True)
        return d * lax.rsqrt(var + EPS)

    h1 = jnp.maximum(conv3x3_instancenorm(x, w1_ref), 0.0)   # conv1 + IN + ReLU (VMEM only)
    o_ref[...] = x + conv3x3_instancenorm(h1, w2_ref)        # conv2 + IN + skip


# ---------------------------------------------------------------------------
# Wrapper
# ---------------------------------------------------------------------------
def residual_block(x, w1, b1, w2, b2):
    """Forward of ResidualBlock. x: (N,C,H,W) f32; w*: (C,C,3,3); b*: (C,)."""
    del b1, b2  # per-channel constants are exactly cancelled by InstanceNorm
    n, c, h, w = x.shape
    hw = h * w
    xf = x.reshape(n, c, hw)

    # Tap-major weights: (ky*3 + kx, C_out, C_in), pre-cast to bf16 for the MXU.
    w1t = jnp.transpose(w1, (2, 3, 0, 1)).reshape(9, c, c).astype(jnp.bfloat16)
    w2t = jnp.transpose(w2, (2, 3, 0, 1)).reshape(9, c, c).astype(jnp.bfloat16)

    # Row / column index of every flattened spatial position (reflection masks).
    rc = jnp.asarray(np.stack([np.repeat(np.arange(h, dtype=np.int32), w),
                               np.tile(np.arange(w, dtype=np.int32), h)]))

    out = pl.pallas_call(
        functools.partial(_residual_block_kernel, h=h, w=w),
        out_shape=jax.ShapeDtypeStruct((n, c, hw), jnp.float32),
        grid=(n,),
        in_specs=[
            pl.BlockSpec((None, c, hw), lambda i: (i, 0, 0)),   # per-batch slab
            pl.BlockSpec((2, hw), lambda i: (0, 0)),            # row/col ids (resident)
            pl.BlockSpec((9, c, c), lambda i: (0, 0, 0)),       # conv1 weights
            pl.BlockSpec((9, c, c), lambda i: (0, 0, 0)),       # conv2 weights
        ],
        out_specs=pl.BlockSpec((None, c, hw), lambda i: (i, 0, 0)),
        # TODO(synk): for production sizes (e.g. C=128, 64x64 spatial) raise
        # vmem_limit_bytes and, on v7x (64 MiB VMEM), tile the HW lane axis.
        compiler_params=pltpu.CompilerParams(
            dimension_semantics=("parallel",)),
    )(xf, rc, w1t, w2t)
    return out.reshape(n, c, h, w)


# ---------------------------------------------------------------------------
# References
# ---------------------------------------------------------------------------
def _reference_f32(x, w1, b1, w2, b2):
    """Exact f32 mirror of the PyTorch module."""
    def rpad(z):
        return jnp.pad(z, ((0, 0), (0, 0), (1, 1), (1, 1)), mode="reflect")

    def conv(z, wgt, bias):
        y = lax.conv_general_dilated(
            z, wgt, (1, 1), "VALID", dimension_numbers=("NCHW", "OIHW", "NCHW"))
        return y + bias[None, :, None, None]

    def inorm(z):
        mu = z.mean(axis=(2, 3), keepdims=True)
        d = z - mu
        var = (d * d).mean(axis=(2, 3), keepdims=True)
        return d * lax.rsqrt(var + EPS)

    hmid = jax.nn.relu(inorm(conv(rpad(x), w1, b1)))
    return x + inorm(conv(rpad(hmid), w2, b2))


def _reference_bf16(x, w1, w2):
    """Same numerics as the kernel: bf16 conv operands, f32 accumulation,
    f32 InstanceNorm stats / ReLU / residual, bias dropped (IN cancels it)."""
    def conv_in(z, wgt):
        zp = jnp.pad(z, ((0, 0), (0, 0), (1, 1), (1, 1)), mode="reflect")
        y = lax.conv_general_dilated(
            zp.astype(jnp.bfloat16), wgt.astype(jnp.bfloat16), (1, 1), "VALID",
            dimension_numbers=("NCHW", "OIHW", "NCHW"),
            preferred_element_type=jnp.float32)
        mu = y.mean(axis=(2, 3), keepdims=True)
        d = y - mu
        var = (d * d).mean(axis=(2, 3), keepdims=True)
        return d * lax.rsqrt(var + EPS)

    hmid = jax.nn.relu(conv_in(x, w1))
    return x + conv_in(hmid, w2)


if __name__ == "__main__":
    N, C, H, W = 2, 4, 16, 16  # batch=2, in_features=4, spatial=16

    key = jax.random.PRNGKey(0)
    kx, k1, k2, k3, k4 = jax.random.split(key, 5)
    x = jax.random.normal(kx, (N, C, H, W), dtype=jnp.float32)
    w1 = 0.1 * jax.random.normal(k1, (C, C, 3, 3), dtype=jnp.float32)
    b1 = 0.1 * jax.random.normal(k2, (C,), dtype=jnp.float32)
    w2 = 0.1 * jax.random.normal(k3, (C, C, 3, 3), dtype=jnp.float32)
    b2 = 0.1 * jax.random.normal(k4, (C,), dtype=jnp.float32)

    out = jax.jit(residual_block)(x, w1, b1, w2, b2)
    out = jax.block_until_ready(out)
    assert out.shape == (N, C, H, W)

    # Tight check: same bf16-operand / f32-accumulate math as the kernel.
    err_kernel = float(jnp.max(jnp.abs(out - _reference_bf16(x, w1, w2))))
    assert err_kernel < 3e-2, f"kernel-math max abs error {err_kernel}"
    # Sanity check vs. exact f32 module semantics (bf16 MXU precision envelope).
    err_module = float(jnp.max(jnp.abs(out - _reference_f32(x, w1, b1, w2, b2))))
    assert err_module < 1e-1, f"module max abs error {err_module}"

    print("KERNEL_OK")
</pallas_src>

<mosaic_0001>
module attributes {stable_mosaic.version = 11 : i64} {
  func.func @_residual_block_kernel(%arg0: i32, %arg1: memref<1x4x256xf32, #tpu.memory_space<vmem>>, %arg2: memref<2x256xi32, #tpu.memory_space<vmem>>, %arg3: memref<9x4x4xbf16, #tpu.memory_space<vmem>>, %arg4: memref<9x4x4xbf16, #tpu.memory_space<vmem>>, %arg5: memref<1x4x256xf32, #tpu.memory_space<vmem>>) attributes {dimension_semantics = [#tpu.dimension_semantics<parallel>], iteration_bounds = array<i64: 2>, scalar_prefetch = 0 : i64, scratch_operands = 0 : i64, tpu.core_type = #tpu.core_type<tc>, window_params = [{transform_indices = @transform_0, window_bounds = array<i64: 1, 4, 256>}, {pipeline_mode = #tpu.pipeline_mode<synchronous>, transform_indices = @transform_1, window_bounds = array<i64: 2, 256>}, {pipeline_mode = #tpu.pipeline_mode<synchronous>, transform_indices = @transform_2, window_bounds = array<i64: 9, 4, 4>}, {pipeline_mode = #tpu.pipeline_mode<synchronous>, transform_indices = @transform_3, window_bounds = array<i64: 9, 4, 4>}, {transform_indices = @transform_4, window_bounds = array<i64: 1, 4, 256>}]} {
    %c0 = arith.constant 0 : index
    %c0_0 = arith.constant 0 : index
    %c0_1 = arith.constant 0 : index
    %0 = vector.load %arg1[%c0, %c0_0, %c0_1] : memref<1x4x256xf32, #tpu.memory_space<vmem>>, vector<1x4x256xf32>
    %1 = vector.shape_cast %0 : vector<1x4x256xf32> to vector<4x256xf32>
    %c0_2 = arith.constant 0 : index
    %c0_3 = arith.constant 0 : index
    %2 = vector.load %arg2[%c0_2, %c0_3] : memref<2x256xi32, #tpu.memory_space<vmem>>, vector<1x256xi32>
    %c1 = arith.constant 1 : index
    %c0_4 = arith.constant 0 : index
    %3 = vector.load %arg2[%c1, %c0_4] : memref<2x256xi32, #tpu.memory_space<vmem>>, vector<1x256xi32>
    %c0_i32 = arith.constant 0 : i32
    %4 = vector.broadcast %c0_i32 : i32 to vector<1x256xi32>
    %5 = arith.cmpi eq, %2, %4 : vector<1x256xi32>
    %c15_i32 = arith.constant 15 : i32
    %6 = vector.broadcast %c15_i32 : i32 to vector<1x256xi32>
    %7 = arith.cmpi eq, %2, %6 : vector<1x256xi32>
    %c0_i32_5 = arith.constant 0 : i32
    %8 = vector.broadcast %c0_i32_5 : i32 to vector<1x256xi32>
    %9 = arith.cmpi eq, %3, %8 : vector<1x256xi32>
    %c15_i32_6 = arith.constant 15 : i32
    %10 = vector.broadcast %c15_i32_6 : i32 to vector<1x256xi32>
    %11 = arith.cmpi eq, %3, %10 : vector<1x256xi32>
    %cst = arith.constant 0.000000e+00 : f32
    %12 = vector.broadcast %cst : f32 to vector<4x256xf32>
    %13 = vector.extract_strided_slice %1 {offsets = [0, 240], sizes = [4, 16], strides = [1, 1]} : vector<4x256xf32> to vector<4x16xf32>
    %14 = vector.extract_strided_slice %1 {offsets = [0, 0], sizes = [4, 240], strides = [1, 1]} : vector<4x256xf32> to vector<4x240xf32>
    %15 = tpu.concatenate %13, %14 in 1 : vector<4x16xf32>, vector<4x240xf32> -> vector<4x256xf32>
    %16 = vector.extract_strided_slice %1 {offsets = [0, 16], sizes = [4, 240], strides = [1, 1]} : vector<4x256xf32> to vector<4x240xf32>
    %17 = vector.extract_strided_slice %1 {offsets = [0, 0], sizes = [4, 16], strides = [1, 1]} : vector<4x256xf32> to vector<4x16xf32>
    %18 = tpu.concatenate %16, %17 in 1 : vector<4x240xf32>, vector<4x16xf32> -> vector<4x256xf32>
    %19 = vector.shape_cast %5 : vector<1x256xi1> to vector<1x256xi1>
    %20 = vector.broadcast %19 : vector<1x256xi1> to vector<4x256xi1>
    %21 = arith.select %20, %18, %15 : vector<4x256xi1>, vector<4x256xf32>
    %22 = vector.shape_cast %7 : vector<1x256xi1> to vector<1x256xi1>
    %23 = vector.broadcast %22 : vector<1x256xi1> to vector<4x256xi1>
    %24 = arith.select %23, %15, %18 : vector<4x256xi1>, vector<4x256xf32>
    %25 = vector.extract_strided_slice %21 {offsets = [0, 255], sizes = [4, 1], strides = [1, 1]} : vector<4x256xf32> to vector<4x1xf32>
    %26 = vector.extract_strided_slice %21 {offsets = [0, 0], sizes = [4, 255], strides = [1, 1]} : vector<4x256xf32> to vector<4x255xf32>
    %27 = tpu.concatenate %25, %26 in 1 : vector<4x1xf32>, vector<4x255xf32> -> vector<4x256xf32>
    %28 = vector.extract_strided_slice %21 {offsets = [0, 1], sizes = [4, 255], strides = [1, 1]} : vector<4x256xf32> to vector<4x255xf32>
    %29 = vector.extract_strided_slice %21 {offsets = [0, 0], sizes = [4, 1], strides = [1, 1]} : vector<4x256xf32> to vector<4x1xf32>
    %30 = tpu.concatenate %28, %29 in 1 : vector<4x255xf32>, vector<4x1xf32> -> vector<4x256xf32>
    %31 = vector.shape_cast %9 : vector<1x256xi1> to vector<1x256xi1>
    %32 = vector.broadcast %31 : vector<1x256xi1> to vector<4x256xi1>
    %33 = arith.select %32, %30, %27 : vector<4x256xi1>, vector<4x256xf32>
    %34 = vector.shape_cast %11 : vector<1x256xi1> to vector<1x256xi1>
    %35 = vector.broadcast %34 : vector<1x256xi1> to vector<4x256xi1>
    %36 = arith.select %35, %27, %30 : vector<4x256xi1>, vector<4x256xf32>
    %37 = vector.extract_strided_slice %1 {offsets = [0, 255], sizes = [4, 1], strides = [1, 1]} : vector<4x256xf32> to vector<4x1xf32>
    %38 = vector.extract_strided_slice %1 {offsets = [0, 0], sizes = [4, 255], strides = [1, 1]} : vector<4x256xf32> to vector<4x255xf32>
    %39 = tpu.concatenate %37, %38 in 1 : vector<4x1xf32>, vector<4x255xf32> -> vector<4x256xf32>
    %40 = vector.extract_strided_slice %1 {offsets = [0, 1], sizes = [4, 255], strides = [1, 1]} : vector<4x256xf32> to vector<4x255xf32>
    %41 = vector.extract_strided_slice %1 {offsets = [0, 0], sizes = [4, 1], strides = [1, 1]} : vector<4x256xf32> to vector<4x1xf32>
    %42 = tpu.concatenate %40, %41 in 1 : vector<4x255xf32>, vector<4x1xf32> -> vector<4x256xf32>
    %43 = vector.shape_cast %9 : vector<1x256xi1> to vector<1x256xi1>
    %44 = vector.broadcast %43 : vector<1x256xi1> to vector<4x256xi1>
    %45 = arith.select %44, %42, %39 : vector<4x256xi1>, vector<4x256xf32>
    %46 = vector.shape_cast %11 : vector<1x256xi1> to vector<1x256xi1>
    %47 = vector.broadcast %46 : vector<1x256xi1> to vector<4x256xi1>
    %48 = arith.select %47, %39, %42 : vector<4x256xi1>, vector<4x256xf32>
    %49 = vector.extract_strided_slice %24 {offsets = [0, 255], sizes = [4, 1], strides = [1, 1]} : vector<4x256xf32> to vector<4x1xf32>
    %50 = vector.extract_strided_slice %24 {offsets = [0, 0], sizes = [4, 255], strides = [1, 1]} : vector<4x256xf32> to vector<4x255xf32>
    %51 = tpu.concatenate %49, %50 in 1 : vector<4x1xf32>, vector<4x255xf32> -> vector<4x256xf32>
    %52 = vector.extract_strided_slice %24 {offsets = [0, 1], sizes = [4, 255], strides = [1, 1]} : vector<4x256xf32> to vector<4x255xf32>
    %53 = vector.extract_strided_slice %24 {offsets = [0, 0], sizes = [4, 1], strides = [1, 1]} : vector<4x256xf32> to vector<4x1xf32>
    %54 = tpu.concatenate %52, %53 in 1 : vector<4x255xf32>, vector<4x1xf32> -> vector<4x256xf32>
    %55 = vector.shape_cast %9 : vector<1x256xi1> to vector<1x256xi1>
    %56 = vector.broadcast %55 : vector<1x256xi1> to vector<4x256xi1>
    %57 = arith.select %56, %54, %51 : vector<4x256xi1>, vector<4x256xf32>
    %58 = vector.shape_cast %11 : vector<1x256xi1> to vector<1x256xi1>
    %59 = vector.broadcast %58 : vector<1x256xi1> to vector<4x256xi1>
    %60 = arith.select %59, %51, %54 : vector<4x256xi1>, vector<4x256xf32>
    %c0_7 = arith.constant 0 : index
    %c0_8 = arith.constant 0 : index
    %c0_9 = arith.constant 0 : index
    %61 = vector.load %arg3[%c0_7, %c0_8, %c0_9] : memref<9x4x4xbf16, #tpu.memory_space<vmem>>, vector<1x4x4xbf16>
    %62 = vector.shape_cast %61 : vector<1x4x4xbf16> to vector<4x4xbf16>
    %63 = arith.truncf %33 : vector<4x256xf32> to vector<4x256xbf16>
    %cst_10 = arith.constant dense<0.000000e+00> : vector<4x256xf32>
    %64 = tpu.matmul %62, %63, %cst_10 {dimension_numbers = #tpu.dot_dimension_numbers<[1], [0], [0], [1], [0, 0, 1, 1], [], []>} : vector<4x4xbf16>, vector<4x256xbf16>, vector<4x256xf32> -> vector<4x256xf32>
    %65 = arith.addf %12, %64 : vector<4x256xf32>
    %c1_11 = arith.constant 1 : index
    %c0_12 = arith.constant 0 : index
    %c0_13 = arith.constant 0 : index
    %66 = vector.load %arg3[%c1_11, %c0_12, %c0_13] : memref<9x4x4xbf16, #tpu.memory_space<vmem>>, vector<1x4x4xbf16>
    %67 = vector.shape_cast %66 : vector<1x4x4xbf16> to vector<4x4xbf16>
    %68 = arith.truncf %21 : vector<4x256xf32> to vector<4x256xbf16>
    %cst_14 = arith.constant dense<0.000000e+00> : vector<4x256xf32>
    %69 = tpu.matmul %67, %68, %cst_14 {dimension_numbers = #tpu.dot_dimension_numbers<[1], [0], [0], [1], [0, 0, 1, 1], [], []>} : vector<4x4xbf16>, vector<4x256xbf16>, vector<4x256xf32> -> vector<4x256xf32>
    %70 = arith.addf %65, %69 : vector<4x256xf32>
    %c2 = arith.constant 2 : index
    %c0_15 = arith.constant 0 : index
    %c0_16 = arith.constant 0 : index
    %71 = vector.load %arg3[%c2, %c0_15, %c0_16] : memref<9x4x4xbf16, #tpu.memory_space<vmem>>, vector<1x4x4xbf16>
    %72 = vector.shape_cast %71 : vector<1x4x4xbf16> to vector<4x4xbf16>
    %73 = arith.truncf %36 : vector<4x256xf32> to vector<4x256xbf16>
    %cst_17 = arith.constant dense<0.000000e+00> : vector<4x256xf32>
    %74 = tpu.matmul %72, %73, %cst_17 {dimension_numbers = #tpu.dot_dimension_numbers<[1], [0], [0], [1], [0, 0, 1, 1], [], []>} : vector<4x4xbf16>, vector<4x256xbf16>, vector<4x256xf32> -> vector<4x256xf32>
    %75 = arith.addf %70, %74 : vector<4x256xf32>
    %c3 = arith.constant 3 : index
    %c0_18 = arith.constant 0 : index
    %c0_19 = arith.constant 0 : index
    %76 = vector.load %arg3[%c3, %c0_18, %c0_19] : memref<9x4x4xbf16, #tpu.memory_space<vmem>>, vector<1x4x4xbf16>
    %77 = vector.shape_cast %76 : vector<1x4x4xbf16> to vector<4x4xbf16>
    %78 = arith.truncf %45 : vector<4x256xf32> to vector<4x256xbf16>
    %cst_20 = arith.constant dense<0.000000e+00> : vector<4x256xf32>
    %79 = tpu.matmul %77, %78, %cst_20 {dimension_numbers = #tpu.dot_dimension_numbers<[1], [0], [0], [1], [0, 0, 1, 1], [], []>} : vector<4x4xbf16>, vector<4x256xbf16>, vector<4x256xf32> -> vector<4x256xf32>
    %80 = arith.addf %75, %79 : vector<4x256xf32>
    %c4 = arith.constant 4 : index
    %c0_21 = arith.constant 0 : index
    %c0_22 = arith.constant 0 : index
    %81 = vector.load %arg3[%c4, %c0_21, %c0_22] : memref<9x4x4xbf16, #tpu.memory_space<vmem>>, vector<1x4x4xbf16>
    %82 = vector.shape_cast %81 : vector<1x4x4xbf16> to vector<4x4xbf16>
    %83 = arith.truncf %1 : vector<4x256xf32> to vector<4x256xbf16>
    %cst_23 = arith.constant dense<0.000000e+00> : vector<4x256xf32>
    %84 = tpu.matmul %82, %83, %cst_23 {dimension_numbers = #tpu.dot_dimension_numbers<[1], [0], [0], [1], [0, 0, 1, 1], [], []>} : vector<4x4xbf16>, vector<4x256xbf16>, vector<4x256xf32> -> vector<4x256xf32>
    %85 = arith.addf %80, %84 : vector<4x256xf32>
    %c5 = arith.constant 5 : index
    %c0_24 = arith.constant 0 : index
    %c0_25 = arith.constant 0 : index
    %86 = vector.load %arg3[%c5, %c0_24, %c0_25] : memref<9x4x4xbf16, #tpu.memory_space<vmem>>, vector<1x4x4xbf16>
    %87 = vector.shape_cast %86 : vector<1x4x4xbf16> to vector<4x4xbf16>
    %88 = arith.truncf %48 : vector<4x256xf32> to vector<4x256xbf16>
    %cst_26 = arith.constant dense<0.000000e+00> : vector<4x256xf32>
    %89 = tpu.matmul %87, %88, %cst_26 {dimension_numbers = #tpu.dot_dimension_numbers<[1], [0], [0], [1], [0, 0, 1, 1], [], []>} : vector<4x4xbf16>, vector<4x256xbf16>, vector<4x256xf32> -> vector<4x256xf32>
    %90 = arith.addf %85, %89 : vector<4x256xf32>
    %c6 = arith.constant 6 : index
    %c0_27 = arith.constant 0 : index
    %c0_28 = arith.constant 0 : index
    %91 = vector.load %arg3[%c6, %c0_27, %c0_28] : memref<9x4x4xbf16, #tpu.memory_space<vmem>>, vector<1x4x4xbf16>
    %92 = vector.shape_cast %91 : vector<1x4x4xbf16> to vector<4x4xbf16>
    %93 = arith.truncf %57 : vector<4x256xf32> to vector<4x256xbf16>
    %cst_29 = arith.constant dense<0.000000e+00> : vector<4x256xf32>
    %94 = tpu.matmul %92, %93, %cst_29 {dimension_numbers = #tpu.dot_dimension_numbers<[1], [0], [0], [1], [0, 0, 1, 1], [], []>} : vector<4x4xbf16>, vector<4x256xbf16>, vector<4x256xf32> -> vector<4x256xf32>
    %95 = arith.addf %90, %94 : vector<4x256xf32>
    %c7 = arith.constant 7 : index
    %c0_30 = arith.constant 0 : index
    %c0_31 = arith.constant 0 : index
    %96 = vector.load %arg3[%c7, %c0_30, %c0_31] : memref<9x4x4xbf16, #tpu.memory_space<vmem>>, vector<1x4x4xbf16>
    %97 = vector.shape_cast %96 : vector<1x4x4xbf16> to vector<4x4xbf16>
    %98 = arith.truncf %24 : vector<4x256xf32> to vector<4x256xbf16>
    %cst_32 = arith.constant dense<0.000000e+00> : vector<4x256xf32>
    %99 = tpu.matmul %97, %98, %cst_32 {dimension_numbers = #tpu.dot_dimension_numbers<[1], [0], [0], [1], [0, 0, 1, 1], [], []>} : vector<4x4xbf16>, vector<4x256xbf16>, vector<4x256xf32> -> vector<4x256xf32>
    %100 = arith.addf %95, %99 : vector<4x256xf32>
    %c8 = arith.constant 8 : index
    %c0_33 = arith.constant 0 : index
    %c0_34 = arith.constant 0 : index
    %101 = vector.load %arg3[%c8, %c0_33, %c0_34] : memref<9x4x4xbf16, #tpu.memory_space<vmem>>, vector<1x4x4xbf16>
    %102 = vector.shape_cast %101 : vector<1x4x4xbf16> to vector<4x4xbf16>
    %103 = arith.truncf %60 : vector<4x256xf32> to vector<4x256xbf16>
    %cst_35 = arith.constant dense<0.000000e+00> : vector<4x256xf32>
    %104 = tpu.matmul %102, %103, %cst_35 {dimension_numbers = #tpu.dot_dimension_numbers<[1], [0], [0], [1], [0, 0, 1, 1], [], []>} : vector<4x4xbf16>, vector<4x256xbf16>, vector<4x256xf32> -> vector<4x256xf32>
    %105 = arith.addf %100, %104 : vector<4x256xf32>
    %cst_36 = arith.constant dense<0.000000e+00> : vector<4xf32>
    %106 = vector.multi_reduction <add>, %105, %cst_36 [1] : vector<4x256xf32> to vector<4xf32>
    %107 = vector.shape_cast %106 : vector<4xf32> to vector<4x1xf32>
    %cst_37 = arith.constant 2.560000e+02 : f32
    %108 = vector.broadcast %cst_37 : f32 to vector<4x1xf32>
    %109 = arith.divf %107, %108 : vector<4x1xf32>
    %110 = vector.broadcast %109 : vector<4x1xf32> to vector<4x256xf32>
    %111 = arith.subf %105, %110 : vector<4x256xf32>
    %112 = arith.mulf %111, %111 : vector<4x256xf32>
    %cst_38 = arith.constant dense<0.000000e+00> : vector<4xf32>
    %113 = vector.multi_reduction <add>, %112, %cst_38 [1] : vector<4x256xf32> to vector<4xf32>
    %114 = vector.shape_cast %113 : vector<4xf32> to vector<4x1xf32>
    %cst_39 = arith.constant 2.560000e+02 : f32
    %115 = vector.broadcast %cst_39 : f32 to vector<4x1xf32>
    %116 = arith.divf %114, %115 : vector<4x1xf32>
    %cst_40 = arith.constant 9.99999974E-6 : f32
    %117 = vector.broadcast %cst_40 : f32 to vector<4x1xf32>
    %118 = arith.addf %116, %117 : vector<4x1xf32>
    %119 = math.rsqrt %118 : vector<4x1xf32>
    %120 = vector.broadcast %119 : vector<4x1xf32> to vector<4x256xf32>
    %121 = arith.mulf %111, %120 : vector<4x256xf32>
    %cst_41 = arith.constant 0.000000e+00 : f32
    %122 = vector.broadcast %cst_41 : f32 to vector<4x256xf32>
    %123 = arith.maximumf %121, %122 : vector<4x256xf32>
    %cst_42 = arith.constant 0.000000e+00 : f32
    %124 = vector.broadcast %cst_42 : f32 to vector<4x256xf32>
    %125 = vector.extract_strided_slice %123 {offsets = [0, 240], sizes = [4, 16], strides = [1, 1]} : vector<4x256xf32> to vector<4x16xf32>
    %126 = vector.extract_strided_slice %123 {offsets = [0, 0], sizes = [4, 240], strides = [1, 1]} : vector<4x256xf32> to vector<4x240xf32>
    %127 = tpu.concatenate %125, %126 in 1 : vector<4x16xf32>, vector<4x240xf32> -> vector<4x256xf32>
    %128 = vector.extract_strided_slice %123 {offsets = [0, 16], sizes = [4, 240], strides = [1, 1]} : vector<4x256xf32> to vector<4x240xf32>
    %129 = vector.extract_strided_slice %123 {offsets = [0, 0], sizes = [4, 16], strides = [1, 1]} : vector<4x256xf32> to vector<4x16xf32>
    %130 = tpu.concatenate %128, %129 in 1 : vector<4x240xf32>, vector<4x16xf32> -> vector<4x256xf32>
    %131 = vector.shape_cast %5 : vector<1x256xi1> to vector<1x256xi1>
    %132 = vector.broadcast %131 : vector<1x256xi1> to vector<4x256xi1>
    %133 = arith.select %132, %130, %127 : vector<4x256xi1>, vector<4x256xf32>
    %134 = vector.shape_cast %7 : vector<1x256xi1> to vector<1x256xi1>
    %135 = vector.broadcast %134 : vector<1x256xi1> to vector<4x256xi1>
    %136 = arith.select %135, %127, %130 : vector<4x256xi1>, vector<4x256xf32>
    %137 = vector.extract_strided_slice %133 {offsets = [0, 255], sizes = [4, 1], strides = [1, 1]} : vector<4x256xf32> to vector<4x1xf32>
    %138 = vector.extract_strided_slice %133 {offsets = [0, 0], sizes = [4, 255], strides = [1, 1]} : vector<4x256xf32> to vector<4x255xf32>
    %139 = tpu.concatenate %137, %138 in 1 : vector<4x1xf32>, vector<4x255xf32> -> vector<4x256xf32>
    %140 = vector.extract_strided_slice %133 {offsets = [0, 1], sizes = [4, 255], strides = [1, 1]} : vector<4x256xf32> to vector<4x255xf32>
    %141 = vector.extract_strided_slice %133 {offsets = [0, 0], sizes = [4, 1], strides = [1, 1]} : vector<4x256xf32> to vector<4x1xf32>
    %142 = tpu.concatenate %140, %141 in 1 : vector<4x255xf32>, vector<4x1xf32> -> vector<4x256xf32>
    %143 = vector.shape_cast %9 : vector<1x256xi1> to vector<1x256xi1>
    %144 = vector.broadcast %143 : vector<1x256xi1> to vector<4x256xi1>
    %145 = arith.select %144, %142, %139 : vector<4x256xi1>, vector<4x256xf32>
    %146 = vector.shape_cast %11 : vector<1x256xi1> to vector<1x256xi1>
    %147 = vector.broadcast %146 : vector<1x256xi1> to vector<4x256xi1>
    %148 = arith.select %147, %139, %142 : vector<4x256xi1>, vector<4x256xf32>
    %149 = vector.extract_strided_slice %123 {offsets = [0, 255], sizes = [4, 1], strides = [1, 1]} : vector<4x256xf32> to vector<4x1xf32>
    %150 = vector.extract_strided_slice %123 {offsets = [0, 0], sizes = [4, 255], strides = [1, 1]} : vector<4x256xf32> to vector<4x255xf32>
    %151 = tpu.concatenate %149, %150 in 1 : vector<4x1xf32>, vector<4x255xf32> -> vector<4x256xf32>
    %152 = vector.extract_strided_slice %123 {offsets = [0, 1], sizes = [4, 255], strides = [1, 1]} : vector<4x256xf32> to vector<4x255xf32>
    %153 = vector.extract_strided_slice %123 {offsets = [0, 0], sizes = [4, 1], strides = [1, 1]} : vector<4x256xf32> to vector<4x1xf32>
    %154 = tpu.concatenate %152, %153 in 1 : vector<4x255xf32>, vector<4x1xf32> -> vector<4x256xf32>
    %155 = vector.shape_cast %9 : vector<1x256xi1> to vector<1x256xi1>
    %156 = vector.broadcast %155 : vector<1x256xi1> to vector<4x256xi1>
    %157 = arith.select %156, %154, %151 : vector<4x256xi1>, vector<4x256xf32>
    %158 = vector.shape_cast %11 : vector<1x256xi1> to vector<1x256xi1>
    %159 = vector.broadcast %158 : vector<1x256xi1> to vector<4x256xi1>
    %160 = arith.select %159, %151, %154 : vector<4x256xi1>, vector<4x256xf32>
    %161 = vector.extract_strided_slice %136 {offsets = [0, 255], sizes = [4, 1], strides = [1, 1]} : vector<4x256xf32> to vector<4x1xf32>
    %162 = vector.extract_strided_slice %136 {offsets = [0, 0], sizes = [4, 255], strides = [1, 1]} : vector<4x256xf32> to vector<4x255xf32>
    %163 = tpu.concatenate %161, %162 in 1 : vector<4x1xf32>, vector<4x255xf32> -> vector<4x256xf32>
    %164 = vector.extract_strided_slice %136 {offsets = [0, 1], sizes = [4, 255], strides = [1, 1]} : vector<4x256xf32> to vector<4x255xf32>
    %165 = vector.extract_strided_slice %136 {offsets = [0, 0], sizes = [4, 1], strides = [1, 1]} : vector<4x256xf32> to vector<4x1xf32>
    %166 = tpu.concatenate %164, %165 in 1 : vector<4x255xf32>, vector<4x1xf32> -> vector<4x256xf32>
    %167 = vector.shape_cast %9 : vector<1x256xi1> to vector<1x256xi1>
    %168 = vector.broadcast %167 : vector<1x256xi1> to vector<4x256xi1>
    %169 = arith.select %168, %166, %163 : vector<4x256xi1>, vector<4x256xf32>
    %170 = vector.shape_cast %11 : vector<1x256xi1> to vector<1x256xi1>
    %171 = vector.broadcast %170 : vector<1x256xi1> to vector<4x256xi1>
    %172 = arith.select %171, %163, %166 : vector<4x256xi1>, vector<4x256xf32>
    %c0_43 = arith.constant 0 : index
    %c0_44 = arith.constant 0 : index
    %c0_45 = arith.constant 0 : index
    %173 = vector.load %arg4[%c0_43, %c0_44, %c0_45] : memref<9x4x4xbf16, #tpu.memory_space<vmem>>, vector<1x4x4xbf16>
    %174 = vector.shape_cast %173 : vector<1x4x4xbf16> to vector<4x4xbf16>
    %175 = arith.truncf %145 : vector<4x256xf32> to vector<4x256xbf16>
    %cst_46 = arith.constant dense<0.000000e+00> : vector<4x256xf32>
    %176 = tpu.matmul %174, %175, %cst_46 {dimension_numbers = #tpu.dot_dimension_numbers<[1], [0], [0], [1], [0, 0, 1, 1], [], []>} : vector<4x4xbf16>, vector<4x256xbf16>, vector<4x256xf32> -> vector<4x256xf32>
    %177 = arith.addf %124, %176 : vector<4x256xf32>
    %c1_47 = arith.constant 1 : index
    %c0_48 = arith.constant 0 : index
    %c0_49 = arith.constant 0 : index
    %178 = vector.load %arg4[%c1_47, %c0_48, %c0_49] : memref<9x4x4xbf16, #tpu.memory_space<vmem>>, vector<1x4x4xbf16>
    %179 = vector.shape_cast %178 : vector<1x4x4xbf16> to vector<4x4xbf16>
    %180 = arith.truncf %133 : vector<4x256xf32> to vector<4x256xbf16>
    %cst_50 = arith.constant dense<0.000000e+00> : vector<4x256xf32>
    %181 = tpu.matmul %179, %180, %cst_50 {dimension_numbers = #tpu.dot_dimension_numbers<[1], [0], [0], [1], [0, 0, 1, 1], [], []>} : vector<4x4xbf16>, vector<4x256xbf16>, vector<4x256xf32> -> vector<4x256xf32>
    %182 = arith.addf %177, %181 : vector<4x256xf32>
    %c2_51 = arith.constant 2 : index
    %c0_52 = arith.constant 0 : index
    %c0_53 = arith.constant 0 : index
    %183 = vector.load %arg4[%c2_51, %c0_52, %c0_53] : memref<9x4x4xbf16, #tpu.memory_space<vmem>>, vector<1x4x4xbf16>
    %184 = vector.shape_cast %183 : vector<1x4x4xbf16> to vector<4x4xbf16>
    %185 = arith.truncf %148 : vector<4x256xf32> to vector<4x256xbf16>
    %cst_54 = arith.constant dense<0.000000e+00> : vector<4x256xf32>
    %186 = tpu.matmul %184, %185, %cst_54 {dimension_numbers = #tpu.dot_dimension_numbers<[1], [0], [0], [1], [0, 0, 1, 1], [], []>} : vector<4x4xbf16>, vector<4x256xbf16>, vector<4x256xf32> -> vector<4x256xf32>
    %187 = arith.addf %182, %186 : vector<4x256xf32>
    %c3_55 = arith.constant 3 : index
    %c0_56 = arith.constant 0 : index
    %c0_57 = arith.constant 0 : index
    %188 = vector.load %arg4[%c3_55, %c0_56, %c0_57] : memref<9x4x4xbf16, #tpu.memory_space<vmem>>, vector<1x4x4xbf16>
    %189 = vector.shape_cast %188 : vector<1x4x4xbf16> to vector<4x4xbf16>
    %190 = arith.truncf %157 : vector<4x256xf32> to vector<4x256xbf16>
    %cst_58 = arith.constant dense<0.000000e+00> : vector<4x256xf32>
    %191 = tpu.matmul %189, %190, %cst_58 {dimension_numbers = #tpu.dot_dimension_numbers<[1], [0], [0], [1], [0, 0, 1, 1], [], []>} : vector<4x4xbf16>, vector<4x256xbf16>, vector<4x256xf32> -> vector<4x256xf32>
    %192 = arith.addf %187, %191 : vector<4x256xf32>
    %c4_59 = arith.constant 4 : index
    %c0_60 = arith.constant 0 : index
    %c0_61 = arith.constant 0 : index
    %193 = vector.load %arg4[%c4_59, %c0_60, %c0_61] : memref<9x4x4xbf16, #tpu.memory_space<vmem>>, vector<1x4x4xbf16>
    %194 = vector.shape_cast %193 : vector<1x4x4xbf16> to vector<4x4xbf16>
    %195 = arith.truncf %123 : vector<4x256xf32> to vector<4x256xbf16>
    %cst_62 = arith.constant dense<0.000000e+00> : vector<4x256xf32>
    %196 = tpu.matmul %194, %195, %cst_62 {dimension_numbers = #tpu.dot_dimension_numbers<[1], [0], [0], [1], [0, 0, 1, 1], [], []>} : vector<4x4xbf16>, vector<4x256xbf16>, vector<4x256xf32> -> vector<4x256xf32>
    %197 = arith.addf %192, %196 : vector<4x256xf32>
    %c5_63 = arith.constant 5 : index
    %c0_64 = arith.constant 0 : index
    %c0_65 = arith.constant 0 : index
    %198 = vector.load %arg4[%c5_63, %c0_64, %c0_65] : memref<9x4x4xbf16, #tpu.memory_space<vmem>>, vector<1x4x4xbf16>
    %199 = vector.shape_cast %198 : vector<1x4x4xbf16> to vector<4x4xbf16>
    %200 = arith.truncf %160 : vector<4x256xf32> to vector<4x256xbf16>
    %cst_66 = arith.constant dense<0.000000e+00> : vector<4x256xf32>
    %201 = tpu.matmul %199, %200, %cst_66 {dimension_numbers = #tpu.dot_dimension_numbers<[1], [0], [0], [1], [0, 0, 1, 1], [], []>} : vector<4x4xbf16>, vector<4x256xbf16>, vector<4x256xf32> -> vector<4x256xf32>
    %202 = arith.addf %197, %201 : vector<4x256xf32>
    %c6_67 = arith.constant 6 : index
    %c0_68 = arith.constant 0 : index
    %c0_69 = arith.constant 0 : index
    %203 = vector.load %arg4[%c6_67, %c0_68, %c0_69] : memref<9x4x4xbf16, #tpu.memory_space<vmem>>, vector<1x4x4xbf16>
    %204 = vector.shape_cast %203 : vector<1x4x4xbf16> to vector<4x4xbf16>
    %205 = arith.truncf %169 : vector<4x256xf32> to vector<4x256xbf16>
    %cst_70 = arith.constant dense<0.000000e+00> : vector<4x256xf32>
    %206 = tpu.matmul %204, %205, %cst_70 {dimension_numbers = #tpu.dot_dimension_numbers<[1], [0], [0], [1], [0, 0, 1, 1], [], []>} : vector<4x4xbf16>, vector<4x256xbf16>, vector<4x256xf32> -> vector<4x256xf32>
    %207 = arith.addf %202, %206 : vector<4x256xf32>
    %c7_71 = arith.constant 7 : index
    %c0_72 = arith.constant 0 : index
    %c0_73 = arith.constant 0 : index
    %208 = vector.load %arg4[%c7_71, %c0_72, %c0_73] : memref<9x4x4xbf16, #tpu.memory_space<vmem>>, vector<1x4x4xbf16>
    %209 = vector.shape_cast %208 : vector<1x4x4xbf16> to vector<4x4xbf16>
    %210 = arith.truncf %136 : vector<4x256xf32> to vector<4x256xbf16>
    %cst_74 = arith.constant dense<0.000000e+00> : vector<4x256xf32>
    %211 = tpu.matmul %209, %210, %cst_74 {dimension_numbers = #tpu.dot_dimension_numbers<[1], [0], [0], [1], [0, 0, 1, 1], [], []>} : vector<4x4xbf16>, vector<4x256xbf16>, vector<4x256xf32> -> vector<4x256xf32>
    %212 = arith.addf %207, %211 : vector<4x256xf32>
    %c8_75 = arith.constant 8 : index
    %c0_76 = arith.constant 0 : index
    %c0_77 = arith.constant 0 : index
    %213 = vector.load %arg4[%c8_75, %c0_76, %c0_77] : memref<9x4x4xbf16, #tpu.memory_space<vmem>>, vector<1x4x4xbf16>
    %214 = vector.shape_cast %213 : vector<1x4x4xbf16> to vector<4x4xbf16>
    %215 = arith.truncf %172 : vector<4x256xf32> to vector<4x256xbf16>
    %cst_78 = arith.constant dense<0.000000e+00> : vector<4x256xf32>
    %216 = tpu.matmul %214, %215, %cst_78 {dimension_numbers = #tpu.dot_dimension_numbers<[1], [0], [0], [1], [0, 0, 1, 1], [], []>} : vector<4x4xbf16>, vector<4x256xbf16>, vector<4x256xf32> -> vector<4x256xf32>
    %217 = arith.addf %212, %216 : vector<4x256xf32>
    %cst_79 = arith.constant dense<0.000000e+00> : vector<4xf32>
    %218 = vector.multi_reduction <add>, %217, %cst_79 [1] : vector<4x256xf32> to vector<4xf32>
    %219 = vector.shape_cast %218 : vector<4xf32> to vector<4x1xf32>
    %cst_80 = arith.constant 2.560000e+02 : f32
    %220 = vector.broadcast %cst_80 : f32 to vector<4x1xf32>
    %221 = arith.divf %219, %220 : vector<4x1xf32>
    %222 = vector.broadcast %221 : vector<4x1xf32> to vector<4x256xf32>
    %223 = arith.subf %217, %222 : vector<4x256xf32>
    %224 = arith.mulf %223, %223 : vector<4x256xf32>
    %cst_81 = arith.constant dense<0.000000e+00> : vector<4xf32>
    %225 = vector.multi_reduction <add>, %224, %cst_81 [1] : vector<4x256xf32> to vector<4xf32>
    %226 = vector.shape_cast %225 : vector<4xf32> to vector<4x1xf32>
    %cst_82 = arith.constant 2.560000e+02 : f32
    %227 = vector.broadcast %cst_82 : f32 to vector<4x1xf32>
    %228 = arith.divf %226, %227 : vector<4x1xf32>
    %cst_83 = arith.constant 9.99999974E-6 : f32
    %229 = vector.broadcast %cst_83 : f32 to vector<4x1xf32>
    %230 = arith.addf %228, %229 : vector<4x1xf32>
    %231 = math.rsqrt %230 : vector<4x1xf32>
    %232 = vector.broadcast %231 : vector<4x1xf32> to vector<4x256xf32>
    %233 = arith.mulf %223, %232 : vector<4x256xf32>
    %234 = arith.addf %1, %233 : vector<4x256xf32>
    %c0_84 = arith.constant 0 : index
    %c0_85 = arith.constant 0 : index
    %c0_86 = arith.constant 0 : index
    %235 = vector.load %arg5[%c0_84, %c0_85, %c0_86] : memref<1x4x256xf32, #tpu.memory_space<vmem>>, vector<1x4x256xf32>
    %236 = vector.shape_cast %235 : vector<1x4x256xf32> to vector<4x256xf32>
    %237 = vector.shape_cast %234 : vector<4x256xf32> to vector<1x4x256xf32>
    tpu.vector_store %arg5[%c0_84, %c0_85, %c0_86], %237 {strides = array<i32>} : memref<1x4x256xf32, #tpu.memory_space<vmem>>, vector<1x4x256xf32>,
    return
  }
  func.func @transform_0(%arg0: i32) -> (i32, i32, i32) {
    %c0_i32 = arith.constant 0 : i32
    %c0_i32_0 = arith.constant 0 : i32
    %c0_i32_1 = arith.constant 0 : i32
    return %arg0, %c0_i32, %c0_i32_0 : i32, i32, i32
  }
  func.func @transform_1(%arg0: i32) -> (i32, i32) {
    %c0_i32 = arith.constant 0 : i32
    %c0_i32_0 = arith.constant 0 : i32
    %c0_i32_1 = arith.constant 0 : i32
    return %c0_i32, %c0_i32_0 : i32, i32
  }
  func.func @transform_2(%arg0: i32) -> (i32, i32, i32) {
    %c0_i32 = arith.constant 0 : i32
    %c0_i32_0 = arith.constant 0 : i32
    %c0_i32_1 = arith.constant 0 : i32
    %c0_i32_2 = arith.constant 0 : i32
    return %c0_i32, %c0_i32_0, %c0_i32_1 : i32, i32, i32
  }
  func.func @transform_3(%arg0: i32) -> (i32, i32, i32) {
    %c0_i32 = arith.constant 0 : i32
    %c0_i32_0 = arith.constant 0 : i32
    %c0_i32_1 = arith.constant 0 : i32
    %c0_i32_2 = arith.constant 0 : i32
    return %c0_i32, %c0_i32_0, %c0_i32_1 : i32, i32, i32
  }
  func.func @transform_4(%arg0: i32) -> (i32, i32, i32) {
    %c0_i32 = arith.constant 0 : i32
    %c0_i32_0 = arith.constant 0 : i32
    %c0_i32_1 = arith.constant 0 : i32
    return %arg0, %c0_i32, %c0_i32_0 : i32, i32, i32
  }
}

</mosaic_0001>

<bundles_post_ra>
// kernel: residual_block.1
= control target key start
LH: loop header
LB: loop body
LE: loop exit
PB: predicated region body
PF: predicated region fallthrough
CT: control target
= control target key end

     0   :  { %s1815_s15 = smov 0   ;;  %s2190_s0 = inlined_call_operand.vmem [shape: f32[2,4,256], index: 0, kind: input, shape index: {}]   ;;  %s2191_s1 = inlined_call_operand.vmem [shape: s32[2,256], index: 1, kind: input, shape index: {}]   ;;  %s2192_s2 = inlined_call_operand.vmem [shape: bf16[9,4,4], index: 2, kind: input, shape index: {}]   ;;  %s2193_s3 = inlined_call_operand.vmem [shape: bf16[9,4,4], index: 3, kind: input, shape index: {}]   ;;  %s2194_s4 = inlined_call_operand.vmem [shape: f32[2,4,256], index: 4, kind: output, shape index: {}]  }
   0x1 LB: > { %s1549_s16 = sadd.s32 4294967295, %s1783_s15   ;;  %p1553_p0 = scmp.ge.s32.totalorder %s1783_s15, 1  ;;  %s1783_s15 = sphi %s1815_s15, %s14_s15  }
   0x2   : > { %p162_p1 = scmp.lt.s32.totalorder %s1783_s15, 3 }
   0x4   : > { %p163_p2 = pnand %p1553_p0, %p162_p1 }
   0x5   : > { %p188_p3 = scmp.lt.s32.totalorder (!%p163_p2), %s1549_s16, 1  ;;  %v1785_v0 = vmov (!%p163_p2), 0   ;;  %s1786_s21 = smov (!%p163_p2), 16   ;;  %v230_v5 = vlaneseq (!%p163_p2)  ;;  %v200_v6 = vld [vmem:[%s2191_s1] ss:$2 sm:$0x3] (!%p163_p2) }
   0x6   : > { %166 = sbr.rel (%p163_p2) target bundleno = 1751 (0x6d7), region = 36  ;;  %399 = vmatprep.mubr.bf16.mxu0 (!%p163_p2), %v1785_v0  ;;  %1017 = vmatprep.mubr.bf16.mxu1 (!%p163_p2), %v1785_v0  ;;  %s1787_s22 = smov (!%p163_p2), 112   ;;  %vm204_vm0 = vcmp.eq.s32.totalorder (!%p163_p2), %v200_v6, 15  ;;  %vm203_vm1 = vcmp.eq.s32.totalorder (!%p163_p2), %v200_v6, 0  ;;  %vm214_vm2 = vcmask (!%p163_p2), 130048   ;;  %vm223_vm3 = vcmask (!%p163_p2), 916480  }
   0x7   : > { %s1788_s23 = smov (!%p163_p2), 1   ;;  %v231_v7 = vshrl.u32 (!%p163_p2), %v230_v5, 7  ;;  %v242_v10 = vsel (!%p163_p2), %vm204_vm0, 1, %v1785_v0  ;;  %v229_v11 = vsel (!%p163_p2), %vm203_vm1, 1, %v1785_v0  ;;  %vm360_vm8 = vcmask (!%p163_p2), 1041408   ;;  %s1789_s28 = smov (!%p163_p2), 127  }
   0x8   : > { %v1559_v40 = vld [vmem:[%s2192_s2 + $0x2] sm:$0x3] (!%p163_p2)  ;;  %vm356_vm9 = vcmask (!%p163_p2), 31744   ;;  %vm262_vm12 = vcmask (!%p163_p2), 7168   ;;  %vm271_vm13 = vcmask (!%p163_p2), 1039360  }
   0x9   : > { %v1849_v8 = vsub.s32 (!%p163_p2), 0, %v231_v7  ;;  %v1851_v9 = vsub.s32 (!%p163_p2), 1, %v231_v7  ;;  %v1558_v42 = vld [vmem:[%s2191_s1 + $0x1] ss:$2 sm:$0x3] (!%p163_p2) }
   0xa   : > { %vm205_vm10 = vcmp.eq.s32.totalorder (!%p163_p2), %v1558_v42, 0  ;;  %vm206_vm11 = vcmp.eq.s32.totalorder (!%p163_p2), %v1558_v42, 15  ;;  %v1585_v24 = vld [vmem:[%s2193_s3 + $0x2] sm:$0x3] (!%p163_p2)  ;;  %v1599_v56 = vld [vmem:[%s2193_s3 + $0xa] sm:$0x3] (!%p163_p2) }
   0xb   : > { %v246_v13 = vrot.slane (!%p163_p2), %v242_v10, %v1849_v8  ;;  %v250_v14 = vrot.slane (!%p163_p2), %v242_v10, %v1851_v9  ;;  %v233_v15 = vrot.slane (!%p163_p2), %v229_v11, %v1849_v8  ;;  %v237_v16 = vrot.slane (!%p163_p2), %v229_v11, %v1851_v9 }
   0xc   : > { %v277_v43 = vsel (!%p163_p2), %vm205_vm10, 1, %v1785_v0  ;;  %v290_v44 = vsel (!%p163_p2), %vm206_vm11, 1, %v1785_v0  ;;  %vm851_vm10 = vcmask (!%p163_p2), 1043456  }
   0xd   : > { %s2212_s16 = smov (!%p188_p3, %s1549_s16), 1  ;;  %vm1859_vm4 = vcmp.eq.s32.totalorder %v246_v13, 1  ;;  %vm1863_vm5 = vcmp.eq.s32.totalorder %v250_v14, 1  ;;  %vm1867_vm6 = vcmp.eq.s32.totalorder %v233_v15, 1  ;;  %vm1871_vm7 = vcmp.eq.s32.totalorder %v237_v16, 1 }
   0xe   : > { %s1613_s17 = sshll.u32 %s2212_s16, 3  ;;  %v285_v46 = vrot.slane %v277_v43, %v1851_v9  ;;  %v281_v47 = vrot.slane %v277_v43, %v1849_v8  ;;  %v298_v49 = vrot.slane %v290_v44, %v1851_v9  ;;  %v294_v50 = vrot.slane %v290_v44, %v1849_v8 }
   0xf   : > { %s192_s20 = scalar_lea.vmem %s2190_s0, %s1613_s17  ;;  %s197_s24 = scalar_lea.vmem %s2194_s4, %s1613_s17 }
  0x10   : > { %v1833_v1 = vld [vmem:[%s192_s20] sm:$0xff]  ;;  %vm1916_vm14 = vcmp.eq.s32.totalorder %v285_v46, 1  ;;  %vm1920_vm15 = vcmp.eq.s32.totalorder %v281_v47, 1  ;;  %vm1924_vm0 = vcmp.eq.s32.totalorder %v298_v49, 1  ;;  %vm1928_vm1 = vcmp.eq.s32.totalorder %v294_v50, 1 }
  0x11   : > { %v1837_v2 = vcombine.high %v1833_v1, %v1833_v1  ;;  %v1570_v50 = vld [vmem:[%s2192_s2 + $0x8] sm:$0x3] }
  0x13   : > { %v1692_v3 = vpack.i.bf16 %v1833_v1, %v1837_v2  ;;  %v1697_v4 = vpack.i.bf16 %v1837_v2, %v1833_v1 }
  0x15   : > { %1693 = vrot.lane.b32.xlu0 %v1692_v3, %s1786_s21 }
  0x19   : > { %1698 = vrot.lane.b32.xlu0 %v1697_v4, %s1787_s22 }
  0x1d   : > { %1713 = vrot.lane.b32.xlu0 %v1692_v3, %s1788_s23 }
  0x87   : > { %v1694_v12 = vpop.permute.xlu0 %1693 }
  0x88   : > { %v1696_v17 = vunpack.i.h.bf16 %v1694_v12  ;;  %v1695_v18 = vunpack.i.l.bf16 %v1694_v12 }
  0x8a   : > { %v215_v26 = vsel %vm214_vm2, %v1696_v17, %v1695_v18  ;;  %v218_v27 = vsel %vm214_vm2, %v1695_v18, %v1696_v17 }
  0x8b   : > { %v1699_v19 = vpop.permute.xlu0 %1698 }
  0x8c   : > { %v1701_v22 = vunpack.i.h.bf16 %v1699_v19  ;;  %v1700_v23 = vunpack.i.l.bf16 %v1699_v19  ;;  %v349_v19 = vld [vmem:[%s2192_s2] sm:$0x3] }
  0x8e   : > { %v224_v28 = vsel %vm223_vm3, %v1700_v23, %v1701_v22  ;;  %v228_v29 = vsel %vm223_vm3, %v1701_v22, %v1700_v23 }
  0x8f   : > { %v1881_v30 = vsel %vm1859_vm4, %v218_v27, %v224_v28  ;;  %v1885_v31 = vsel %vm1863_vm5, %v215_v26, %v228_v29  ;;  %v240_v32 = vsel %vm1867_vm6, %v224_v28, %v218_v27  ;;  %v241_v33 = vsel %vm1871_vm7, %v228_v29, %v215_v26  ;;  %v1714_v48 = vpop.permute.xlu0 %1713 }
  0x90   : > { %v1722_v34 = vpack.i.bf16 %v1881_v30, %v1885_v31  ;;  %v1702_v35 = vpack.i.bf16 %v240_v32, %v241_v33  ;;  %v355_v36 = vpack.c.bf16 %v241_v33, %v241_v33  ;;  %v354_v37 = vpack.c.bf16 %v240_v32, %v240_v32 }
  0x91   : > { %v1707_v39 = vpack.i.bf16 %v241_v33, %v240_v32  ;;  %v1727_v41 = vpack.i.bf16 %v1885_v31, %v1881_v30  ;;  %v1716_v51 = vunpack.i.h.bf16 %v1714_v48  ;;  %v1715_v52 = vunpack.i.l.bf16 %v1714_v48  ;;  %v1564_v33 = vld [vmem:[%s2192_s2 + $0x4] sm:$0x3] }
  0x92   : > { %1723 = vrot.lane.b32.xlu0 %v1722_v34, %s1788_s23  ;;  %1703 = vrot.lane.b32.xlu1 %v1702_v35, %s1788_s23  ;;  %v362_v38 = vsel %vm360_vm8, %v354_v37, 0  ;;  %v574_v35 = vpack.c.bf16 %v1837_v2, %v1837_v2  ;;  %v1567_v37 = vld [vmem:[%s2192_s2 + $0x6] sm:$0x3] }
  0x93   : > { %1560 = vmatprep.subr.msk.bf16.mxu0 %vm360_vm8, %v355_v36  ;;  %v308_v62 = vsel %vm262_vm12, %v1716_v51, %v1715_v52  ;;  %v311_v26 = vsel %vm262_vm12, %v1715_v52, %v1716_v51  ;;  %v573_v36 = vpack.c.bf16 %v1833_v1, %v1833_v1 }
  0x94   : > { %368 = vmatpush1.bf16.msra.mxu0 %v362_v38 }
  0x96   : > { %1708 = vrot.lane.b32.xlu1 %v1707_v39, %s1789_s28  ;;  %v579_v39 = vsel %vm360_vm8, %v573_v36, 0 }
  0x97   : > { %1561 = vmatmul.mubr.msk.bf16.vlgmr.msra.gmra.mrb[0].mxu0 %vm356_vm9, %v1559_v40 }
  0x98   : > { %449 = vmatprep.mubr.bf16.mxu0 %v1785_v0 }
  0x9a   : > { %1718 = vrot.lane.b32.xlu1 %v1697_v4, %s1789_s28 }
  0x9e   : > { %1728 = vrot.lane.b32.xlu1 %v1727_v41, %s1789_s28 }
 0x104   : > { %v1704_v45 = vpop.permute.xlu1 %1703  ;;  %v1724_v41 = vpop.permute.xlu0 %1723 }
 0x105   : > { %v1706_v53 = vunpack.i.h.bf16 %v1704_v45  ;;  %v1705_v54 = vunpack.i.l.bf16 %v1704_v45  ;;  %v1726_v44 = vunpack.i.h.bf16 %v1724_v41  ;;  %v1725_v45 = vunpack.i.l.bf16 %v1724_v41 }
 0x107   : > { %v263_v63 = vsel %vm262_vm12, %v1706_v53, %v1705_v54  ;;  %v266_v3 = vsel %vm262_vm12, %v1705_v54, %v1706_v53  ;;  %v332_v48 = vsel %vm262_vm12, %v1726_v44, %v1725_v45 }
 0x108   : > { %v1709_v55 = vpop.permute.xlu1 %1708 }
 0x109   : > { %v1711_v58 = vunpack.i.h.bf16 %v1709_v55  ;;  %v1710_v59 = vunpack.i.l.bf16 %v1709_v55  ;;  %v335_v55 = vsel %vm262_vm12, %v1725_v45, %v1726_v44 }
 0x10b   : > { %v272_v4 = vsel %vm271_vm13, %v1710_v59, %v1711_v58  ;;  %v276_v5 = vsel %vm271_vm13, %v1711_v58, %v1710_v59 }
 0x10c   : > { %v1719_v6 = vpop.permute.xlu1 %1718  ;;  %v289_v7 = vsel %vm1916_vm14, %v276_v5, %v263_v63  ;;  %v288_v8 = vsel %vm1920_vm15, %v272_v4, %v266_v3  ;;  %v302_v9 = vsel %vm1924_vm0, %v263_v63, %v276_v5  ;;  %v301_v10 = vsel %vm1928_vm1, %v266_v3, %v272_v4  ;;  %v1576_v5 = vld [vmem:[%s2192_s2 + $0xc] sm:$0x3] }
 0x10d   : > { %v1721_v11 = vunpack.i.h.bf16 %v1719_v6  ;;  %v1720_v12 = vunpack.i.l.bf16 %v1719_v6  ;;  %v351_v13 = vpack.c.bf16 %v289_v7, %v289_v7  ;;  %v350_v14 = vpack.c.bf16 %v288_v8, %v288_v8 }
 0x10e   : > { %v461_v17 = vpack.c.bf16 %v302_v9, %v302_v9  ;;  %v460_v18 = vpack.c.bf16 %v301_v10, %v301_v10  ;;  %v742_v3 = vpack.c.bf16 %v1885_v31, %v1885_v31  ;;  %v741_v4 = vpack.c.bf16 %v1881_v30, %v1881_v30  ;;  %v1579_v9 = vld [vmem:[%s2192_s2 + $0xe] sm:$0x3] }
 0x10f   : > { %v320_v15 = vsel %vm271_vm13, %v1721_v11, %v1720_v12  ;;  %1562 = vmatprep.subr.msk.bf16.mxu0 %vm360_vm8, %v351_v13  ;;  %v412_v16 = vsel %vm360_vm8, %v350_v14, 0  ;;  %v316_v27 = vsel %vm271_vm13, %v1720_v12, %v1721_v11  ;;  %v1582_v11 = vld [vmem:[%s2192_s2 + $0x10] sm:$0x3] }
 0x110   : > { %418 = vmatpush1.bf16.msra.mxu0 %v412_v16  ;;  %v322_v22 = vsel %vm1916_vm14, %v320_v15, %v308_v62  ;;  %v466_v28 = vsel %vm360_vm8, %v460_v18, 0  ;;  %v321_v29 = vsel %vm1920_vm15, %v316_v27, %v311_v26  ;;  %v324_v38 = vsel %vm1924_vm0, %v308_v62, %v320_v15  ;;  %v1729_v2 = vpop.permute.xlu1 %1728  ;;  %v1573_v62 = vld [vmem:[%s2192_s2 + $0xa] sm:$0x3] }
 0x111   : > { %1565 = vmatprep.subr.msk.bf16.mxu0 %vm360_vm8, %v461_v17  ;;  %v517_v23 = vpack.c.bf16 %v322_v22, %v322_v22  ;;  %v516_v32 = vpack.c.bf16 %v321_v29, %v321_v29  ;;  %v630_v40 = vpack.c.bf16 %v324_v38, %v324_v38  ;;  %v1731_v42 = vunpack.i.h.bf16 %v1729_v2 }
 0x112   : > { %v1730_v43 = vunpack.i.l.bf16 %v1729_v2  ;;  %v323_v46 = vsel %vm1928_vm1, %v311_v26, %v316_v27  ;;  %v747_v7 = vsel %vm360_vm8, %v741_v4, 0 }
 0x113   : > { %1563 = vmatmul.mubr.msk.bf16.vlgmr.msra.gmra.mrb[0].mxu0 %vm356_vm9, %v349_v19  ;;  %v522_v34 = vsel %vm360_vm8, %v516_v32, 0  ;;  %v629_v49 = vpack.c.bf16 %v323_v46, %v323_v46 }
 0x114   : > { %472 = vmatpush1.bf16.msra.mxu0 %v466_v28  ;;  %503 = vmatprep.mubr.bf16.mxu0 %v1785_v0  ;;  %v344_v47 = vsel %vm271_vm13, %v1731_v42, %v1730_v43  ;;  %v340_v54 = vsel %vm271_vm13, %v1730_v43, %v1731_v42 }
 0x115   : > { %1568 = vmatprep.subr.msk.bf16.mxu0 %vm360_vm8, %v517_v23  ;;  %v346_v51 = vsel %vm1916_vm14, %v344_v47, %v332_v48  ;;  %v635_v52 = vsel %vm360_vm8, %v629_v49, 0  ;;  %v345_v58 = vsel %vm1920_vm15, %v340_v54, %v335_v55  ;;  %v348_v6 = vsel %vm1924_vm0, %v332_v48, %v344_v47 }
 0x116   : > { %v686_v53 = vpack.c.bf16 %v346_v51, %v346_v51  ;;  %v685_v59 = vpack.c.bf16 %v345_v58, %v345_v58  ;;  %v798_v31 = vpack.c.bf16 %v348_v6, %v348_v6  ;;  %v347_v30 = vsel %vm1928_vm1, %v335_v55, %v340_v54 }
 0x117   : > { %v797_v8 = vpack.c.bf16 %v347_v30, %v347_v30 }
 0x118   : > { %v691_v63 = vsel %vm360_vm8, %v685_v59, 0 }
 0x119   : > { %v803_v10 = vsel %vm360_vm8, %v797_v8, 0 }
 0x11f   : > { %1566 = vmatmul.mubr.msk.bf16.vlgmr.msra.gmra.mrb[0].mxu0 %vm356_vm9, %v1564_v33 }
 0x120   : > { %528 = vmatpush1.bf16.msra.mxu0 %v522_v34  ;;  %559 = vmatprep.mubr.bf16.mxu0 %v1785_v0 }
 0x121   : > { %1571 = vmatprep.subr.msk.bf16.mxu0 %vm360_vm8, %v574_v35 }
 0x12b   : > { %1569 = vmatmul.mubr.msk.bf16.vlgmr.msra.gmra.mrb[0].mxu0 %vm356_vm9, %v1567_v37 }
 0x12c   : > { %585 = vmatpush1.bf16.msra.mxu0 %v579_v39  ;;  %616 = vmatprep.mubr.bf16.mxu0 %v1785_v0 }
 0x12d   : > { %1574 = vmatprep.subr.msk.bf16.mxu0 %vm360_vm8, %v630_v40 }
 0x137   : > { %1572 = vmatmul.mubr.msk.bf16.vlgmr.msra.gmra.mrb[0].mxu0 %vm356_vm9, %v1570_v50 }
 0x138   : > { %641 = vmatpush1.bf16.msra.mxu0 %v635_v52  ;;  %672 = vmatprep.mubr.bf16.mxu0 %v1785_v0 }
 0x139   : > { %1577 = vmatprep.subr.msk.bf16.mxu0 %vm360_vm8, %v686_v53 }
 0x143   : > { %1575 = vmatmul.mubr.msk.bf16.vlgmr.msra.gmra.mrb[0].mxu0 %vm356_vm9, %v1573_v62 }
 0x144   : > { %697 = vmatpush1.bf16.msra.mxu0 %v691_v63  ;;  %728 = vmatprep.mubr.bf16.mxu0 %v1785_v0 }
 0x145   : > { %1580 = vmatprep.subr.msk.bf16.mxu0 %vm360_vm8, %v742_v3 }
 0x14f   : > { %1578 = vmatmul.mubr.msk.bf16.vlgmr.msra.gmra.mrb[0].mxu0 %vm356_vm9, %v1576_v5 }
 0x150   : > { %753 = vmatpush1.bf16.msra.mxu0 %v747_v7  ;;  %784 = vmatprep.mubr.bf16.mxu0 %v1785_v0 }
 0x151   : > { %1583 = vmatprep.subr.msk.bf16.mxu0 %vm360_vm8, %v798_v31 }
 0x15b   : > { %1581 = vmatmul.mubr.msk.bf16.vlgmr.msra.gmra.mrb[0].mxu0 %vm356_vm9, %v1579_v9 }
 0x15c   : > { %809 = vmatpush1.bf16.msra.mxu0 %v803_v10  ;;  %840 = vmatprep.mubr.bf16.mxu0 %v1785_v0 }
 0x167   : > { %1584 = vmatmul.mubr.msk.bf16.vlgmr.msra.gmra.mrb[0].mxu0 %vm356_vm9, %v1582_v11 }
 0x23a   : > { %v842_v12 = vpop.f32.mrb[0].mxu0 }
 0x23b   : > { %v852_v13 = vsel %vm851_vm10, %v842_v12, 0.0  ;;  %v844_v14 = vpop.f32.mrb[1].mxu0 }
 0x23c   : > { %v853_v15 = vsel %vm851_vm10, %v844_v14, 0.0  ;;  %v846_v16 = vpop.f32.mrb[2].mxu0 }
 0x23d   : > { %v847_v17 = vpop.f32.mrb[3].mxu0  ;;  %v854_v18 = vadd.f32 %v853_v15, %v852_v13 }
 0x23f   : > { %855 = vadd.xlane.f32.xlu0 %v854_v18 }
 0x2cc   : > { %v856_v19 = vpop.xlane.xlu0 %855 }
 0x2cd   : > { %v858_v22 = vmul.f32 0.00390625, %v856_v19 }
 0x2cf   : > { %v859_v23 = vsub.f32 %v842_v12, %v858_v22  ;;  %v860_v26 = vsub.f32 %v844_v14, %v858_v22 }
 0x2d1   : > { %v861_v27 = vmul.f32 %v859_v23, %v859_v23  ;;  %v862_v28 = vmul.f32 %v860_v26, %v860_v26 }
 0x2d3   : > { %v863_v29 = vsel %vm851_vm10, %v861_v27, 0.0  ;;  %v864_v32 = vsel %vm851_vm10, %v862_v28, 0.0 }
 0x2d4   : > { %v865_v33 = vadd.f32 %v864_v32, %v863_v29 }
 0x2d6   : > { %866 = vadd.xlane.f32.xlu1 %v865_v33 }
 0x363   : > { %v867_v34 = vpop.xlane.xlu1 %866 }
 0x364   : > { %v868_v35 = vmul.f32 0.00390625, %v867_v34 }
 0x366   : > { %v869_v36 = vadd.f32 1e-05, %v868_v35  ;;  %v969_v35 = vld [vmem:[%s2193_s3] sm:$0x3] }
 0x368   : > { %1773 = vrsqrt.f32 %v869_v36 }
 0x372   : > { %v1774_v37 = vpop.eup %1773 }
 0x373   : > { %v871_v38 = vmul.f32 %v1774_v37, %v859_v23  ;;  %v872_v39 = vmul.f32 %v1774_v37, %v860_v26 }
 0x375   : > { %v2035_v2 = vmax.f32 %v871_v38, 0.0  ;;  %v2037_v40 = vmax.f32 %v872_v39, 0.0 }
 0x377   : > { %v1737_v41 = vpack.i.bf16 %v2037_v40, %v2035_v2  ;;  %v1732_v42 = vpack.i.bf16 %v2035_v2, %v2037_v40 }
 0x379   : > { %1738 = vrot.lane.b32.xlu1 %v1737_v41, %s1787_s22  ;;  %1733 = vrot.lane.b32.xlu0 %v1732_v42, %s1786_s21 }
 0x3eb   : > { %v1739_v43 = vpop.permute.xlu1 %1738  ;;  %v1734_v44 = vpop.permute.xlu0 %1733 }
 0x3ec   : > { %v1741_v45 = vunpack.i.h.bf16 %v1739_v43  ;;  %v1740_v46 = vunpack.i.l.bf16 %v1739_v43  ;;  %v1736_v47 = vunpack.i.h.bf16 %v1734_v44  ;;  %v1735_v48 = vunpack.i.l.bf16 %v1734_v44  ;;  %v1590_v44 = vld [vmem:[%s2193_s3 + $0x4] sm:$0x3] }
 0x3ee   : > { %v890_v49 = vsel %vm223_vm3, %v1740_v46, %v1741_v45  ;;  %v894_v50 = vsel %vm223_vm3, %v1741_v45, %v1740_v46  ;;  %v882_v51 = vsel %vm214_vm2, %v1736_v47, %v1735_v48  ;;  %v885_v52 = vsel %vm214_vm2, %v1735_v48, %v1736_v47  ;;  %v1593_v48 = vld [vmem:[%s2193_s3 + $0x6] sm:$0x3] }
 0x3ef   : > { %v895_v53 = vsel %vm1867_vm6, %v890_v49, %v885_v52  ;;  %v896_v54 = vsel %vm1871_vm7, %v894_v50, %v882_v51  ;;  %v2062_v25 = vsel %vm1859_vm4, %v885_v52, %v890_v49  ;;  %v2066_v3 = vsel %vm1863_vm5, %v882_v51, %v894_v50 }
 0x3f0   : > { %v1747_v55 = vpack.i.bf16 %v896_v54, %v895_v53  ;;  %v1742_v58 = vpack.i.bf16 %v895_v53, %v896_v54  ;;  %v975_v59 = vpack.c.bf16 %v896_v54, %v896_v54  ;;  %v974_v62 = vpack.c.bf16 %v895_v53, %v895_v53 }
 0x3f1   : > { %v1767_v4 = vpack.i.bf16 %v2066_v3, %v2062_v25  ;;  %v1762_v5 = vpack.i.bf16 %v2062_v25, %v2066_v3  ;;  %v1191_v46 = vpack.c.bf16 %v2037_v40, %v2037_v40  ;;  %v1190_v47 = vpack.c.bf16 %v2035_v2, %v2035_v2 }
 0x3f2   : > { %1748 = vrot.lane.b32.xlu1 %v1747_v55, %s1789_s28  ;;  %1743 = vrot.lane.b32.xlu0 %v1742_v58, %s1788_s23  ;;  %v980_v63 = vsel %vm360_vm8, %v974_v62, 0  ;;  %v1358_v57 = vpack.c.bf16 %v2062_v25, %v2062_v25 }
 0x3f3   : > { %1586 = vmatprep.subr.msk.bf16.mxu1 %vm360_vm8, %v975_v59  ;;  %v1196_v40 = vsel %vm360_vm8, %v1190_v47, 0 }
 0x3f4   : > { %986 = vmatpush1.bf16.msra.mxu1 %v980_v63 }
 0x3f6   : > { %1758 = vrot.lane.b32.xlu1 %v1737_v41, %s1789_s28  ;;  %1753 = vrot.lane.b32.xlu0 %v1732_v42, %s1788_s23 }
 0x3f7   : > { %1587 = vmatmul.mubr.msk.bf16.vlgmr.msra.gmra.mrb[0].mxu1 %vm356_vm9, %v1585_v24  ;;  %v1596_v24 = vld [vmem:[%s2193_s3 + $0x8] sm:$0x3] }
 0x3f8   : > { %1067 = vmatprep.mubr.bf16.mxu1 %v1785_v0 }
 0x3fa   : > { %1768 = vrot.lane.b32.xlu1 %v1767_v4, %s1789_s28  ;;  %1763 = vrot.lane.b32.xlu0 %v1762_v5, %s1788_s23 }
 0x464   : > { %v1749_v20 = vpop.permute.xlu1 %1748  ;;  %v1744_v21 = vpop.permute.xlu0 %1743 }
 0x465   : > { %v1751_v6 = vunpack.i.h.bf16 %v1749_v20  ;;  %v1750_v7 = vunpack.i.l.bf16 %v1749_v20  ;;  %v1746_v31 = vunpack.i.h.bf16 %v1744_v21  ;;  %v1745_v30 = vunpack.i.l.bf16 %v1744_v21 }
 0x467   : > { %v914_v8 = vsel %vm271_vm13, %v1750_v7, %v1751_v6  ;;  %v918_v9 = vsel %vm271_vm13, %v1751_v6, %v1750_v7  ;;  %v906_v10 = vsel %vm262_vm12, %v1746_v31, %v1745_v30  ;;  %v909_v11 = vsel %vm262_vm12, %v1745_v30, %v1746_v31 }
 0x468   : > { %v1759_v12 = vpop.permute.xlu1 %1758  ;;  %v1754_v13 = vpop.permute.xlu0 %1753  ;;  %v920_v14 = vsel %vm1916_vm14, %v918_v9, %v906_v10  ;;  %v919_v15 = vsel %vm1920_vm15, %v914_v8, %v909_v11  ;;  %v922_v16 = vsel %vm1924_vm0, %v906_v10, %v918_v9  ;;  %v921_v17 = vsel %vm1928_vm1, %v909_v11, %v914_v8  ;;  %v1602_v9 = vld [vmem:[%s2193_s3 + $0xc] sm:$0x3] }
 0x469   : > { %v1761_v18 = vunpack.i.h.bf16 %v1759_v12  ;;  %v1760_v19 = vunpack.i.l.bf16 %v1759_v12  ;;  %v1756_v22 = vunpack.i.h.bf16 %v1754_v13  ;;  %v1755_v23 = vunpack.i.l.bf16 %v1754_v13  ;;  %v1605_v13 = vld [vmem:[%s2193_s3 + $0xe] sm:$0x3] }
 0x46a   : > { %v971_v26 = vpack.c.bf16 %v920_v14, %v920_v14  ;;  %v970_v27 = vpack.c.bf16 %v919_v15, %v919_v15  ;;  %v1079_v33 = vpack.c.bf16 %v922_v16, %v922_v16  ;;  %v1078_v34 = vpack.c.bf16 %v921_v17, %v921_v17  ;;  %v1608_v14 = vld [vmem:[%s2193_s3 + $0x10] sm:$0x3] }
 0x46b   : > { %v940_v28 = vsel %vm271_vm13, %v1761_v18, %v1760_v19  ;;  %v928_v29 = vsel %vm262_vm12, %v1756_v22, %v1755_v23  ;;  %v936_v39 = vsel %vm271_vm13, %v1760_v19, %v1761_v18  ;;  %v931_v41 = vsel %vm262_vm12, %v1755_v23, %v1756_v22 }
 0x46c   : > { %1588 = vmatprep.subr.msk.bf16.mxu1 %vm360_vm8, %v971_v26  ;;  %v1030_v32 = vsel %vm360_vm8, %v970_v27, 0  ;;  %v942_v36 = vsel %vm1916_vm14, %v940_v28, %v928_v29  ;;  %v1084_v37 = vsel %vm360_vm8, %v1078_v34, 0  ;;  %v941_v42 = vsel %vm1920_vm15, %v936_v39, %v931_v41  ;;  %v1769_v50 = vpop.permute.xlu1 %1768  ;;  %v1764_v51 = vpop.permute.xlu0 %1763 }
 0x46d   : > { %1036 = vmatpush1.bf16.msra.mxu1 %v1030_v32  ;;  %v1135_v38 = vpack.c.bf16 %v942_v36, %v942_v36  ;;  %v1134_v43 = vpack.c.bf16 %v941_v42, %v941_v42  ;;  %v944_v49 = vsel %vm1924_vm0, %v928_v29, %v940_v28  ;;  %v1771_v53 = vunpack.i.h.bf16 %v1769_v50 }
 0x46e   : > { %1591 = vmatprep.subr.msk.bf16.mxu1 %vm360_vm8, %v1079_v33  ;;  %v1247_v52 = vpack.c.bf16 %v944_v49, %v944_v49  ;;  %v1770_v54 = vunpack.i.l.bf16 %v1769_v50  ;;  %v1766_v2 = vunpack.i.h.bf16 %v1764_v51  ;;  %v1765_v55 = vunpack.i.l.bf16 %v1764_v51 }
 0x46f   : > { %v1140_v45 = vsel %vm360_vm8, %v1134_v43, 0  ;;  %v943_v58 = vsel %vm1928_vm1, %v931_v41, %v936_v39  ;;  %v1359_v8 = vpack.c.bf16 %v2066_v3, %v2066_v3  ;;  %v1364_v11 = vsel %vm360_vm8, %v1358_v57, 0 }
 0x470   : > { %1589 = vmatmul.mubr.msk.bf16.vlgmr.msra.gmra.mrb[0].mxu1 %vm356_vm9, %v969_v35  ;;  %v964_v59 = vsel %vm271_vm13, %v1771_v53, %v1770_v54  ;;  %v952_v62 = vsel %vm262_vm12, %v1766_v2, %v1765_v55  ;;  %v1246_v63 = vpack.c.bf16 %v943_v58, %v943_v58  ;;  %v960_v21 = vsel %vm271_vm13, %v1770_v54, %v1771_v53 }
 0x471   : > { %1090 = vmatpush1.bf16.msra.mxu1 %v1084_v37  ;;  %1121 = vmatprep.mubr.bf16.mxu1 %v1785_v0  ;;  %v966_v4 = vsel %vm1916_vm14, %v964_v59, %v952_v62  ;;  %v955_v6 = vsel %vm262_vm12, %v1765_v55, %v1766_v2  ;;  %v968_v10 = vsel %vm1924_vm0, %v952_v62, %v964_v59 }
 0x472   : > { %1594 = vmatprep.subr.msk.bf16.mxu1 %vm360_vm8, %v1135_v38  ;;  %v1252_v5 = vsel %vm360_vm8, %v1246_v63, 0  ;;  %v1303_v20 = vpack.c.bf16 %v966_v4, %v966_v4  ;;  %v965_v7 = vsel %vm1920_vm15, %v960_v21, %v955_v6  ;;  %v1415_v3 = vpack.c.bf16 %v968_v10, %v968_v10 }
 0x473   : > { %v1302_v31 = vpack.c.bf16 %v965_v7, %v965_v7  ;;  %v967_v25 = vsel %vm1928_vm1, %v955_v6, %v960_v21 }
 0x474   : > { %v1414_v12 = vpack.c.bf16 %v967_v25, %v967_v25 }
 0x475   : > { %v1308_v30 = vsel %vm360_vm8, %v1302_v31, 0 }
 0x476   : > { %v1420_v60 = vsel %vm360_vm8, %v1414_v12, 0 }
 0x47c   : > { %1592 = vmatmul.mubr.msk.bf16.vlgmr.msra.gmra.mrb[0].mxu1 %vm356_vm9, %v1590_v44 }
 0x47d   : > { %1146 = vmatpush1.bf16.msra.mxu1 %v1140_v45  ;;  %1177 = vmatprep.mubr.bf16.mxu1 %v1785_v0 }
 0x47e   : > { %1597 = vmatprep.subr.msk.bf16.mxu1 %vm360_vm8, %v1191_v46 }
 0x488   : > { %1595 = vmatmul.mubr.msk.bf16.vlgmr.msra.gmra.mrb[0].mxu1 %vm356_vm9, %v1593_v48 }
 0x489   : > { %1202 = vmatpush1.bf16.msra.mxu1 %v1196_v40  ;;  %1233 = vmatprep.mubr.bf16.mxu1 %v1785_v0 }
 0x48a   : > { %1600 = vmatprep.subr.msk.bf16.mxu1 %vm360_vm8, %v1247_v52 }
 0x494   : > { %1598 = vmatmul.mubr.msk.bf16.vlgmr.msra.gmra.mrb[0].mxu1 %vm356_vm9, %v1596_v24 }
 0x495   : > { %1258 = vmatpush1.bf16.msra.mxu1 %v1252_v5  ;;  %1289 = vmatprep.mubr.bf16.mxu1 %v1785_v0 }
 0x496   : > { %1603 = vmatprep.subr.msk.bf16.mxu1 %vm360_vm8, %v1303_v20 }
 0x4a0   : > { %1601 = vmatmul.mubr.msk.bf16.vlgmr.msra.gmra.mrb[0].mxu1 %vm356_vm9, %v1599_v56 }
 0x4a1   : > { %1314 = vmatpush1.bf16.msra.mxu1 %v1308_v30  ;;  %1345 = vmatprep.mubr.bf16.mxu1 %v1785_v0 }
 0x4a2   : > { %1606 = vmatprep.subr.msk.bf16.mxu1 %vm360_vm8, %v1359_v8 }
 0x4ac   : > { %1604 = vmatmul.mubr.msk.bf16.vlgmr.msra.gmra.mrb[0].mxu1 %vm356_vm9, %v1602_v9 }
 0x4ad   : > { %1370 = vmatpush1.bf16.msra.mxu1 %v1364_v11  ;;  %1401 = vmatprep.mubr.bf16.mxu1 %v1785_v0 }
 0x4ae   : > { %1609 = vmatprep.subr.msk.bf16.mxu1 %vm360_vm8, %v1415_v3 }
 0x4b8   : > { %1607 = vmatmul.mubr.msk.bf16.vlgmr.msra.gmra.mrb[0].mxu1 %vm356_vm9, %v1605_v13 }
 0x4b9   : > { %1426 = vmatpush1.bf16.msra.mxu1 %v1420_v60  ;;  %1457 = vmatprep.mubr.bf16.mxu1 %v1785_v0 }
 0x4c4   : > { %1610 = vmatmul.mubr.msk.bf16.vlgmr.msra.gmra.mrb[0].mxu1 %vm356_vm9, %v1608_v14 }
 0x597   : > { %v1459_v61 = vpop.f32.mrb[0].mxu1 }
 0x598   : > { %v1468_v15 = vsel %vm851_vm10, %v1459_v61, 0.0  ;;  %v1461_v16 = vpop.f32.mrb[1].mxu1 }
 0x599   : > { %v1469_v17 = vsel %vm851_vm10, %v1461_v16, 0.0  ;;  %v1463_v18 = vpop.f32.mrb[2].mxu1 }
 0x59a   : > { %v1464_v19 = vpop.f32.mrb[3].mxu1  ;;  %v1470_v22 = vadd.f32 %v1469_v17, %v1468_v15 }
 0x59c   : > { %1471 = vadd.xlane.f32.xlu0 %v1470_v22 }
 0x629   : > { %v1472_v23 = vpop.xlane.xlu0 %1471 }
 0x62a   : > { %v1473_v26 = vmul.f32 0.00390625, %v1472_v23 }
 0x62c   : > { %v1474_v27 = vsub.f32 %v1459_v61, %v1473_v26  ;;  %v1475_v0 = vsub.f32 %v1461_v16, %v1473_v26 }
 0x62e   : > { %v1476_v28 = vmul.f32 %v1474_v27, %v1474_v27  ;;  %v1477_v29 = vmul.f32 %v1475_v0, %v1475_v0 }
 0x630   : > { %v1478_v32 = vsel %vm851_vm10, %v1476_v28, 0.0  ;;  %v1479_v33 = vsel %vm851_vm10, %v1477_v29, 0.0 }
 0x631   : > { %v1480_v34 = vadd.f32 %v1479_v33, %v1478_v32 }
 0x633   : > { %1481 = vadd.xlane.f32.xlu1 %v1480_v34 }
 0x6c0   : > { %v1482_v35 = vpop.xlane.xlu1 %1481 }
 0x6c1   : > { %v1483_v36 = vmul.f32 0.00390625, %v1482_v35 }
 0x6c3   : > { %v1484_v37 = vadd.f32 1e-05, %v1483_v36 }
 0x6c5   : > { %1775 = vrsqrt.f32 %v1484_v37 }
 0x6cf   : > { %v1776_v38 = vpop.eup %1775 }
 0x6d0   : > { %v1486_v39 = vmul.f32 %v1776_v38, %v1474_v27  ;;  %v1487_v41 = vmul.f32 %v1776_v38, %v1475_v0 }
 0x6d2   : > { %v1490_v42 = vcombine.low %v1486_v39, %v1487_v41 }
 0x6d4   : > { %v1492_v43 = vadd.f32 %v1490_v42, %v1833_v1 }
 0x6d6   : > { %1493 = vst [vmem:[%s197_s24] sm:$0xff] %v1492_v43 }
 0x6d7 PF: > { %s14_s15 = sadd.s32 1, %s1783_s15  }
 0x6d8   : > { %p11_p4 = scmp.ge.s32.totalorder %s14_s15, 4  }
 0x6da   :  { %13 = sbr.rel (!%p11_p4) target bundleno = 1 (0x1), region = 83 }

</bundles_post_ra>
